<compile_context>
chip_gen: v7x
topology: tpu7x:2x2x1
jax: 0.10.0
libtpu: 0.0.40
codegen_flags: <defaults>
</compile_context>

<pallas_src>
import functools

import jax
import jax.numpy as jnp
from jax.experimental import pallas as pl
from jax.experimental.pallas import tpu as pltpu


def _dice_sums_kernel(x_ref, lab_ref, out_ref):
    # Zero this batch-row's resident accumulator at the start of its spatial loop.
    @pl.when(pl.program_id(1) == 0)
    def _():
        out_ref[...] = jnp.zeros_like(out_ref)

    x = x_ref[...].astype(jnp.float32)             # (C, tile_s), classes on sublanes
    C, T = x.shape
    labs = lab_ref[...]                            # (1, tile_s) int32

    # softmax[label] = 1 / sum_c exp(x_c - x_label); labels outside [0, C)
    # (retained ignore_index / -1 padding) select x_label = 0 but are masked
    # out by `valid`, matching one_hot-with-zeros semantics.
    iota_c = jax.lax.broadcasted_iota(jnp.int32, (C, T), 0)
    is_lab = iota_c == labs                                              # (C, T)
    x_lab = jnp.sum(jnp.where(is_lab, x, 0.0), axis=0, keepdims=True)    # (1, T)
    denom = jnp.sum(jnp.exp(x - x_lab), axis=0, keepdims=True)           # (1, T), >= 1 for valid labels
    valid = jnp.logical_and(labs >= 0, labs < C).astype(jnp.float32)     # (1, T)
    inter = valid * pl.reciprocal(denom, approx=False)                   # (1, T)

    # Tree-reduce to scalars (VPU adds + one cross-lane reduce), then a single
    # one-vreg RMW on the resident accumulator: row 0 = intersection partials,
    # row 1 = target (one-hot) count partials. Every lane carries the same
    # accumulated scalar; JAX reads lane 0.
    inter_s = jnp.sum(inter)
    valid_s = jnp.sum(valid)
    row = jax.lax.broadcasted_iota(jnp.int32, (2, 128), 0)
    out_ref[...] += jnp.where(row == 0, inter_s, valid_s)


def _choose_tile_s(S, C, x_itemsize, *, vmem_budget_bytes=28 << 20, hard_cap=1 << 18):
    """Largest lane tile (multiple of 128) fitting the double-buffered VMEM budget.

    Accounts for sublane padding: a (C, T) block occupies pad8(C) sublanes and the
    (1, T) int32 labels row occupies 8 sublanes in VMEM.
    """
    c_pad = -(-C // 8) * 8
    per_lane = 2 * (c_pad * x_itemsize + 8 * 4)     # double-buffered bytes per spatial lane
    cap = min(hard_cap, (vmem_budget_bytes // per_lane) // 128 * 128)
    cap = max(cap, 128)
    s_pad128 = -(-S // 128) * 128
    if s_pad128 <= cap:
        return s_pad128                             # single spatial tile (pad if ragged)
    if S % 128 == 0:
        for k in range(cap // 128, 0, -1):
            t = k * 128
            if t < 64 * 128:                        # don't accept overhead-dominated tiles
                break
            if S % t == 0:
                return t
    return cap                                      # no good divisor: caller pads S


def _dice_sums(x_ncs, labels_n1s, tile_s):
    N, C, S = x_ncs.shape
    assert S % tile_s == 0, "spatial extent must be a multiple of the lane tile"
    grid = (N, S // tile_s)

    c_pad = -(-C // 8) * 8
    buf_bytes = 2 * tile_s * (c_pad * x_ncs.dtype.itemsize + 8 * 4)
    vmem_limit = int(min(max(buf_bytes + (6 << 20), 16 << 20), 48 << 20))

    return pl.pallas_call(
        _dice_sums_kernel,
        out_shape=jax.ShapeDtypeStruct((N, 2, 128), jnp.float32),
        grid_spec=pltpu.PrefetchScalarGridSpec(
            num_scalar_prefetch=0,
            grid=grid,
            in_specs=[
                # NCHW read directly: (C, tile_s) block, class axis on sublanes.
                pl.BlockSpec((None, C, tile_s), lambda n, s: (n, 0, s)),
                # Lane-dense labels row.
                pl.BlockSpec((None, 1, tile_s), lambda n, s: (n, 0, s)),
            ],
            # Per-n accumulator block, resident across the s axis of that row.
            out_specs=pl.BlockSpec((None, 2, 128), lambda n, s: (n, 0, 0)),
        ),
        compiler_params=pltpu.CompilerParams(
            dimension_semantics=("parallel", "arbitrary"),
            vmem_limit_bytes=vmem_limit,
        ),
    )(x_ncs, labels_n1s)


@functools.partial(jax.jit, static_argnames=("smooth", "ignore_index"))
def dice_loss(output, target, *, smooth=1.0, ignore_index=255):
    """output: (N, C, H, W) float logits (f32 or bf16); target: (N, H, W) int labels."""
    N, C, H, W = output.shape
    S = H * W
    target = target.astype(jnp.int32)

    # ignore_index handling (mirrors the PyTorch branch semantics):
    # if ignore_index not in range(target.min(), target.max()) and any label equals
    # ignore_index, replace those labels with target.min().
    tmin = jnp.min(target)
    tmax = jnp.max(target)
    in_range = (ignore_index >= tmin) & (ignore_index < tmax)   # range() excludes max
    has_ignore = jnp.any(target == ignore_index)
    do_replace = jnp.logical_and(jnp.logical_not(in_range), has_ignore)
    target = jnp.where(do_replace & (target == ignore_index), tmin, target)

    # NCHW kept as-is: only free metadata reshapes, no transpose pass over HBM.
    x = output.reshape(N, C, S)
    labels = target.reshape(N, 1, S)

    tile_s = _choose_tile_s(S, C, output.dtype.itemsize)
    S_pad = -(-S // tile_s) * tile_s
    if S_pad != S:
        # Padded pixels: labels -1 (invalid; contribute nothing to intersection
        # or target count), logits 0 (masked out by validity anyway).
        x = jnp.pad(x, ((0, 0), (0, 0), (0, S_pad - S)))
        labels = jnp.pad(labels, ((0, 0), (0, 0), (0, S_pad - S)), constant_values=-1)

    sums = _dice_sums(x, labels, tile_s)            # (N, 2, 128); lane 0 holds the totals
    intersection = jnp.sum(sums[:, 0, 0])
    tgt_sum = jnp.sum(sums[:, 1, 0])
    out_sum = jnp.asarray(N * H * W, jnp.float32)   # softmax rows sum to 1 exactly
    loss = 1.0 - (2.0 * intersection + smooth) / (out_sum + tgt_sum + smooth)
    return loss


def _reference_dice_loss(output, target, smooth=1.0, ignore_index=255):
    # pure-JAX reference mirroring the PyTorch forward
    N, C, H, W = output.shape
    target = target.astype(jnp.int32)
    tmin, tmax = jnp.min(target), jnp.max(target)
    in_range = (ignore_index >= tmin) & (ignore_index < tmax)
    has_ignore = jnp.any(target == ignore_index)
    do_replace = jnp.logical_and(jnp.logical_not(in_range), has_ignore)
    target = jnp.where(do_replace & (target == ignore_index), tmin, target)
    onehot = jax.nn.one_hot(target, C, axis=1, dtype=jnp.float32)   # (N,C,H,W)
    probs = jax.nn.softmax(output.astype(jnp.float32), axis=1)
    inter = jnp.sum(probs * onehot)
    return 1.0 - (2.0 * inter + smooth) / (jnp.sum(probs) + jnp.sum(onehot) + smooth)


if __name__ == "__main__":
    key = jax.random.PRNGKey(0)
    k1, k2 = jax.random.split(key)
    N, C, H, W = 2, 4, 16, 16
    logits = jax.random.normal(k1, (N, C, H, W), dtype=jnp.float32)
    labels = jax.random.randint(k2, (N, H, W), 0, C, dtype=jnp.int32)
    # sprinkle in some ignore_index labels to exercise that branch
    labels = labels.at[0, 0, :4].set(255)

    loss = dice_loss(logits, labels, smooth=1.0, ignore_index=255)
    jax.block_until_ready(loss)

    ref = _reference_dice_loss(logits, labels, smooth=1.0, ignore_index=255)
    assert jnp.allclose(loss, ref, atol=1e-5, rtol=1e-5), (loss, ref)
    print("KERNEL_OK")
</pallas_src>

<mosaic_0001>
module attributes {stable_mosaic.version = 11 : i64} {
  func.func @_dice_sums_kernel(%arg0: i32, %arg1: i32, %arg2: memref<1x4x256xf32, #tpu.memory_space<vmem>>, %arg3: memref<1x1x256xi32, #tpu.memory_space<vmem>>, %arg4: memref<1x2x128xf32, #tpu.memory_space<vmem>>) attributes {dimension_semantics = [#tpu.dimension_semantics<parallel>, #tpu.dimension_semantics<arbitrary>], iteration_bounds = array<i64: 2, 1>, scalar_prefetch = 0 : i64, scratch_operands = 0 : i64, tpu.core_type = #tpu.core_type<tc>, window_params = [{transform_indices = @transform_0, window_bounds = array<i64: 1, 4, 256>}, {transform_indices = @transform_1, window_bounds = array<i64: 1, 1, 256>}, {transform_indices = @transform_2, window_bounds = array<i64: 1, 2, 128>}]} {
    %c0_i32 = arith.constant 0 : i32
    %0 = arith.cmpi eq, %arg1, %c0_i32 : i32
    %1 = arith.extui %0 : i1 to i32
    %c0_i32_0 = arith.constant 0 : i32
    %2 = arith.cmpi ne, %1, %c0_i32_0 : i32
    scf.if %2 {
      %cst_18 = arith.constant 0.000000e+00 : f32
      %48 = vector.broadcast %cst_18 : f32 to vector<2x128xf32>
      %c0_19 = arith.constant 0 : index
      %c0_20 = arith.constant 0 : index
      %c0_21 = arith.constant 0 : index
      %49 = vector.load %arg4[%c0_19, %c0_20, %c0_21] : memref<1x2x128xf32, #tpu.memory_space<vmem>>, vector<1x2x128xf32>
      %50 = vector.shape_cast %49 : vector<1x2x128xf32> to vector<2x128xf32>
      %51 = vector.shape_cast %48 : vector<2x128xf32> to vector<1x2x128xf32>
      tpu.vector_store %arg4[%c0_19, %c0_20, %c0_21], %51 {strides = array<i32>} : memref<1x2x128xf32, #tpu.memory_space<vmem>>, vector<1x2x128xf32>,
    } else {
    }
    %c0 = arith.constant 0 : index
    %c0_1 = arith.constant 0 : index
    %c0_2 = arith.constant 0 : index
    %3 = vector.load %arg2[%c0, %c0_1, %c0_2] : memref<1x4x256xf32, #tpu.memory_space<vmem>>, vector<1x4x256xf32>
    %4 = vector.shape_cast %3 : vector<1x4x256xf32> to vector<4x256xf32>
    %c0_3 = arith.constant 0 : index
    %c0_4 = arith.constant 0 : index
    %c0_5 = arith.constant 0 : index
    %5 = vector.load %arg3[%c0_3, %c0_4, %c0_5] : memref<1x1x256xi32, #tpu.memory_space<vmem>>, vector<1x1x256xi32>
    %6 = vector.shape_cast %5 : vector<1x1x256xi32> to vector<1x256xi32>
    %7 = tpu.iota {dimensions = array<i32: 0>} : vector<4x256xi32>
    %8 = vector.broadcast %6 : vector<1x256xi32> to vector<4x256xi32>
    %9 = arith.cmpi eq, %7, %8 : vector<4x256xi32>
    %cst = arith.constant 0.000000e+00 : f32
    %10 = vector.broadcast %cst : f32 to vector<4x256xf32>
    %11 = arith.select %9, %4, %10 : vector<4x256xi1>, vector<4x256xf32>
    %cst_6 = arith.constant dense<0.000000e+00> : vector<256xf32>
    %12 = vector.multi_reduction <add>, %11, %cst_6 [0] : vector<4x256xf32> to vector<256xf32>
    %13 = vector.shape_cast %12 : vector<256xf32> to vector<1x256xf32>
    %14 = vector.broadcast %13 : vector<1x256xf32> to vector<4x256xf32>
    %15 = arith.subf %4, %14 : vector<4x256xf32>
    %16 = math.exp %15 : vector<4x256xf32>
    %cst_7 = arith.constant dense<0.000000e+00> : vector<256xf32>
    %17 = vector.multi_reduction <add>, %16, %cst_7 [0] : vector<4x256xf32> to vector<256xf32>
    %18 = vector.shape_cast %17 : vector<256xf32> to vector<1x256xf32>
    %c0_i32_8 = arith.constant 0 : i32
    %19 = vector.broadcast %c0_i32_8 : i32 to vector<1x256xi32>
    %20 = arith.cmpi sge, %6, %19 : vector<1x256xi32>
    %c4_i32 = arith.constant 4 : i32
    %21 = vector.broadcast %c4_i32 : i32 to vector<1x256xi32>
    %22 = arith.cmpi slt, %6, %21 : vector<1x256xi32>
    %23 = arith.andi %20, %22 : vector<1x256xi1>
    %24 = arith.extui %23 : vector<1x256xi1> to vector<1x256xi32>
    %25 = arith.sitofp %24 : vector<1x256xi32> to vector<1x256xf32>
    %26 = tpu.reciprocal %18 : vector<1x256xf32> -> vector<1x256xf32>
    %27 = arith.mulf %25, %26 : vector<1x256xf32>
    %28 = vector.shape_cast %27 : vector<1x256xf32> to vector<1x1x256xf32>
    %cst_9 = arith.constant dense<0.000000e+00> : vector<1xf32>
    %29 = vector.multi_reduction <add>, %28, %cst_9 [1, 2] : vector<1x1x256xf32> to vector<1xf32>
    %30 = vector.shape_cast %29 : vector<1xf32> to vector<1x1x1xf32>
    %31 = vector.extract %30[0, 0, 0] : f32 from vector<1x1x1xf32>
    %32 = vector.shape_cast %25 : vector<1x256xf32> to vector<1x1x256xf32>
    %cst_10 = arith.constant dense<0.000000e+00> : vector<1xf32>
    %33 = vector.multi_reduction <add>, %32, %cst_10 [1, 2] : vector<1x1x256xf32> to vector<1xf32>
    %34 = vector.shape_cast %33 : vector<1xf32> to vector<1x1x1xf32>
    %35 = vector.extract %34[0, 0, 0] : f32 from vector<1x1x1xf32>
    %36 = tpu.iota {dimensions = array<i32: 0>} : vector<2x128xi32>
    %c0_11 = arith.constant 0 : index
    %c0_12 = arith.constant 0 : index
    %c0_13 = arith.constant 0 : index
    %37 = vector.load %arg4[%c0_11, %c0_12, %c0_13] : memref<1x2x128xf32, #tpu.memory_space<vmem>>, vector<1x2x128xf32>
    %38 = vector.shape_cast %37 : vector<1x2x128xf32> to vector<2x128xf32>
    %c0_i32_14 = arith.constant 0 : i32
    %39 = vector.broadcast %c0_i32_14 : i32 to vector<2x128xi32>
    %40 = arith.cmpi eq, %36, %39 : vector<2x128xi32>
    %41 = vector.broadcast %31 : f32 to vector<2x128xf32>
    %42 = vector.broadcast %35 : f32 to vector<2x128xf32>
    %43 = arith.select %40, %41, %42 : vector<2x128xi1>, vector<2x128xf32>
    %44 = arith.addf %38, %43 : vector<2x128xf32>
    %c0_15 = arith.constant 0 : index
    %c0_16 = arith.constant 0 : index
    %c0_17 = arith.constant 0 : index
    %45 = vector.load %arg4[%c0_15, %c0_16, %c0_17] : memref<1x2x128xf32, #tpu.memory_space<vmem>>, vector<1x2x128xf32>
    %46 = vector.shape_cast %45 : vector<1x2x128xf32> to vector<2x128xf32>
    %47 = vector.shape_cast %44 : vector<2x128xf32> to vector<1x2x128xf32>
    tpu.vector_store %arg4[%c0_15, %c0_16, %c0_17], %47 {strides = array<i32>} : memref<1x2x128xf32, #tpu.memory_space<vmem>>, vector<1x2x128xf32>,
    return
  }
  func.func @transform_0(%arg0: i32, %arg1: i32) -> (i32, i32, i32) {
    %c0_i32 = arith.constant 0 : i32
    %c0_i32_0 = arith.constant 0 : i32
    return %arg0, %c0_i32, %arg1 : i32, i32, i32
  }
  func.func @transform_1(%arg0: i32, %arg1: i32) -> (i32, i32, i32) {
    %c0_i32 = arith.constant 0 : i32
    %c0_i32_0 = arith.constant 0 : i32
    return %arg0, %c0_i32, %arg1 : i32, i32, i32
  }
  func.func @transform_2(%arg0: i32, %arg1: i32) -> (i32, i32, i32) {
    %c0_i32 = arith.constant 0 : i32
    %c0_i32_0 = arith.constant 0 : i32
    %c0_i32_1 = arith.constant 0 : i32
    return %arg0, %c0_i32, %c0_i32_0 : i32, i32, i32
  }
}

</mosaic_0001>

<bundles_post_ra>
// kernel: dice_loss.1
= control target key start
LH: loop header
LB: loop body
LE: loop exit
PB: predicated region body
PF: predicated region fallthrough
CT: control target
= control target key end

     0   :  { %s519_s9 = smov 0   ;;  %s521_s10 = smov 0   ;;  %s585_s0 = inlined_call_operand.vmem [shape: f32[2,4,256], index: 0, kind: input, shape index: {}]   ;;  %s586_s1 = inlined_call_operand.vmem [shape: s32[2,1,256], index: 1, kind: input, shape index: {}]   ;;  %s587_s2 = inlined_call_operand.vmem [shape: f32[2,2,128], index: 2, kind: output, shape index: {}]  }
   0x1   :  { %s523_s11 = smov 0  }
   0x2 LB: > { %s24_s12 = sadd.s32 1, %s496_s10  ;;  %p432_p0 = scmp.ge.s32.totalorder %s500_s11, 1  ;;  %s500_s11 = sphi %s523_s11, %s12_s11   ;;  %s496_s10 = sphi %s521_s10, %s589_s10   ;;  %s492_s9 = sphi %s519_s9, %s588_s9  }
   0x3   : > { %p26_p1 = scmp.ge.s32.totalorder %s24_s12, 2  ;;  %p147_p2 = scmp.lt.s32.totalorder %s500_s11, 3 }
   0x5   : > { %s591_s12 = smov (%p26_p1, %s24_s12), 0  ;;  %p148_p3 = pnand %p432_p0, %p147_p2 }
   0x6   : > { %p181_p4 = scmp.lt.s32.totalorder (!%p148_p3), %s492_s9, 1  ;;  %v210_v0 = vlaneseq (!%p148_p3)  ;;  %vm227_vm0 = vcmask (!%p148_p3), 1043456   ;;  %v502_v44 = vmov (!%p148_p3), 1966171168   ;;  %v503_v52 = vmov (!%p148_p3), 0.0  }
   0x7   : > { %151 = sbr.rel (%p148_p3) target bundleno = 305 (0x131), region = 28  ;;  %v277_v45 = vunpack.c.l.s4 (!%p148_p3), %v502_v44  ;;  %vm303_vm6 = vcmask (!%p148_p3), 1040384  }
   0x8   : > { %v539_v1 = vshrl.u32 (!%p148_p3), %v210_v0, 7 }
   0x9   : > { %v278_v46 = vunpack.c.0.s8 (!%p148_p3), %v277_v45 }
   0xa   : > { %v544_v2 = vsub.s32 (!%p148_p3), 0, %v539_v1  ;;  %v547_v3 = vsub.s32 (!%p148_p3), 1, %v539_v1  ;;  %vm340_vm7 = vcmp.eq.s32.totalorder (!%p148_p3), %v539_v1, 0 }
   0xb   : > { %v281_v48 = vsub.s32 (!%p148_p3), %v278_v46, %v539_v1 }
   0xe   : > { %s593_s9 = smov (!%p181_p4, %s492_s9), 1 }
   0xf   : > { %s440_s13 = sshll.u32 %s593_s9, 3  ;;  %s435_s14 = sshll.u32 %s593_s9, 1 }
  0x10   : > { %s188_s17 = scalar_lea.vmem %s585_s0, %s440_s13  ;;  %s197_s20 = scalar_lea.vmem %s586_s1, %s435_s14 }
  0x11   : > { %v208_v4 = vld [vmem:[%s188_s17] sm:$0xff]  ;;  %s202_s23 = scalar_lea.vmem %s587_s2, %s435_s14 }
  0x12   : > { %v209_v5 = vld [vmem:[%s197_s20] sm:$0x3]  ;;  %v223_v8 = vcombine.high %v208_v4, %v208_v4  ;;  %207 = vst [vmem:[%s202_s23] sm:$0x3] %v503_v52 }
  0x13   : > { %v215_v6 = vrot.slane %v209_v5, %v544_v2  ;;  %v219_v7 = vrot.slane %v209_v5, %v547_v3  ;;  %vm266_vm3 = vcmp.ge.s32.totalorder %v209_v5, 0  ;;  %vm267_vm4 = vcmp.lt.s32.totalorder %v209_v5, 4 }
  0x14   : > { %vm268_vm5 = vmand %vm266_vm3, %vm267_vm4 }
  0x15   : > { %vm220_vm1 = vcmp.eq.s32.totalorder %v539_v1, %v215_v6  ;;  %vm221_vm2 = vcmp.eq.s32.totalorder %v539_v1, %v219_v7  ;;  %v437_v53 = vsel %vm268_vm5, 1.0, %v503_v52 }
  0x16   : > { %v225_v9 = vsel %vm220_vm1, %v208_v4, 0.0  ;;  %v226_v10 = vsel %vm221_vm2, %v223_v8, 0.0  ;;  %v320_v56 = vrot.slane %v437_v53, %v544_v2  ;;  %v324_v57 = vrot.slane %v437_v53, %v547_v3 }
  0x17   : > { %v228_v11 = vsel %vm227_vm0, %v225_v9, 0.0  ;;  %v235_v12 = vsel %vm227_vm0, %v226_v10, 0.0 }
  0x18   : > { %v229_v13 = vrot.slane %v228_v11, 4  ;;  %v236_v14 = vrot.slane %v235_v12, 4  ;;  %v327_v62 = vsel %vm303_vm6, %v320_v56, 0.0  ;;  %v328_v63 = vsel %vm303_vm6, %v324_v57, 0.0 }
  0x1a   : > { %v230_v15 = vadd.f32 %v229_v13, %v228_v11  ;;  %v237_v16 = vadd.f32 %v236_v14, %v235_v12 }
  0x1c   : > { %v231_v17 = vrot.slane %v230_v15, 2  ;;  %v238_v18 = vrot.slane %v237_v16, 2 }
  0x1e   : > { %v232_v19 = vadd.f32 %v231_v17, %v230_v15  ;;  %v239_v20 = vadd.f32 %v238_v18, %v237_v16  ;;  %v339_v17 = vld [vmem:[%s202_s23] sm:$0x3] }
  0x20   : > { %v233_v21 = vrot.slane %v232_v19, 1  ;;  %v240_v22 = vrot.slane %v239_v20, 1 }
  0x22   : > { %v234_v23 = vadd.f32 %v233_v21, %v232_v19  ;;  %v241_v24 = vadd.f32 %v240_v22, %v239_v20 }
  0x24   : > { %v244_v25 = vcombine.low %v234_v23, %v241_v24 }
  0x26   : > { %v246_v26 = vsub.f32 %v208_v4, %v244_v25  ;;  %v329_v4 = vadd.f32 %v328_v63, %v327_v62 }
  0x28   : > { %v247_v27 = vmul.f32 1.442695, %v246_v26 }
  0x2a   : > { %472 = vpow2.f32 %v247_v27 }
  0x34   : > { %v473_v28 = vpop.eup %472 }
  0x35   : > { %v250_v29 = vcombine.high %v473_v28, %v473_v28  ;;  %v252_v30 = vsel %vm227_vm0, %v473_v28, 0.0 }
  0x36   : > { %v253_v31 = vrot.slane %v252_v30, 4 }
  0x37   : > { %v259_v32 = vsel %vm227_vm0, %v250_v29, 0.0 }
  0x38   : > { %v254_v33 = vadd.f32 %v253_v31, %v252_v30  ;;  %v260_v34 = vrot.slane %v259_v32, 4 }
  0x3a   : > { %v255_v35 = vrot.slane %v254_v33, 2  ;;  %v261_v36 = vadd.f32 %v260_v34, %v259_v32 }
  0x3c   : > { %v256_v37 = vadd.f32 %v255_v35, %v254_v33  ;;  %v262_v38 = vrot.slane %v261_v36, 2 }
  0x3e   : > { %v257_v39 = vrot.slane %v256_v37, 1  ;;  %v263_v40 = vadd.f32 %v262_v38, %v261_v36 }
  0x40   : > { %v258_v41 = vadd.f32 %v257_v39, %v256_v37  ;;  %v264_v42 = vrot.slane %v263_v40, 1 }
  0x42   : > { %v265_v43 = vadd.f32 %v264_v42, %v263_v40  ;;  %474 = vrcp.f32 %v258_v41 }
  0x44   : > { %476 = vrcp.f32 %v265_v43 }
  0x4c   : > { %v475_v47 = vpop.eup %474 }
  0x4e   : > { %v477_v49 = vpop.eup %476 }
  0x4f   : > { %v275_v50 = vcombine.low %v475_v47, %v477_v49 }
  0x51   : > { %v282_v51 = vrot.slane %v275_v50, %v281_v48 }
  0x53   : > { %v289_v54 = vrot.slane %v282_v51, %v281_v48 }
  0x55   : > { %v291_v55 = vmul.f32 %v437_v53, %v289_v54 }
  0x57   : > { %v296_v58 = vrot.slane %v291_v55, %v544_v2  ;;  %v300_v59 = vrot.slane %v291_v55, %v547_v3 }
  0x59   : > { %v304_v60 = vsel %vm303_vm6, %v296_v58, 0.0  ;;  %v305_v61 = vsel %vm303_vm6, %v300_v59, 0.0 }
  0x5a   : > { %v306_v0 = vadd.f32 %v305_v61, %v304_v60 }
  0x5c   : > { %307 = vadd.xlane.f32.xlu0 %v306_v0 }
  0x60   : > { %330 = vadd.xlane.f32.xlu0 %v329_v4 }
  0xe9   : > { %v308_v5 = vpop.xlane.xlu0 %307 }
  0xea   : > { %v309_v6 = vrot.slane %v308_v5, 4 }
  0xec   : > { %v310_v7 = vadd.f32 %v309_v6, %v308_v5 }
  0xed   : > { %v331_v2 = vpop.xlane.xlu0 %330 }
  0xee   : > { %v311_v8 = vrot.slane %v310_v7, 2  ;;  %v332_v3 = vrot.slane %v331_v2, 4 }
  0xf0   : > { %v333_v9 = vadd.f32 %v332_v3, %v331_v2  ;;  %v312_v10 = vadd.f32 %v311_v8, %v310_v7 }
  0xf2   : > { %v334_v11 = vrot.slane %v333_v9, 2  ;;  %v313_v12 = vrot.slane %v312_v10, 1 }
  0xf4   : > { %v335_v13 = vadd.f32 %v334_v11, %v333_v9  ;;  %v314_v14 = vadd.f32 %v313_v12, %v312_v10 }
  0xf6   : > { %441 = vpush %v314_v14  ;;  %v336_v15 = vrot.slane %v335_v13, 1 }
  0xf8   : > { %v337_v16 = vadd.f32 %v336_v15, %v335_v13 }
  0xfa   : > { %443 = vpush %v337_v16 }
 0x127   : > { %s442_s24 = spop %441 }
 0x128   : > { %v341_v18 = vstv %s442_s24 }
 0x12b   : > { %s444_s25 = spop %443 }
 0x12c   : > { %v342_v19 = vstv %s444_s25 }
 0x12d   : > { %v343_v20 = vsel %vm340_vm7, %v341_v18, %v342_v19 }
 0x12e   : > { %v344_v21 = vadd.f32 %v343_v20, %v339_v17 }
 0x130   : > { %345 = vst [vmem:[%s202_s23] sm:$0x3] %v344_v21 }
 0x131 PF: > { %s12_s11 = sadd.s32 1, %s500_s11   ;;  %s588_s9 = smov %s496_s10 }
 0x132   : > { %p9_p5 = scmp.ge.s32.totalorder %s12_s11, 4   ;;  %s589_s10 = smov %s591_s12 }
 0x134   :  { %11 = sbr.rel (!%p9_p5) target bundleno = 2 (0x2), region = 65 }

</bundles_post_ra>
